<compile_context>
chip_gen: v6e
topology: v6e:2x2x1
jax: 0.10.0
libtpu: 0.0.40
codegen_flags: <defaults>
</compile_context>

<pallas_src>
import jax
import jax.numpy as jnp
from jax.experimental import pallas as pl
from jax.experimental.pallas import tpu as pltpu

_EPS = 1e-8            # torch.nn.functional.cosine_similarity default eps
_LANE = 128
_VMEM_LIMIT = 48 * 1024 * 1024    # scoped limit: safe on v7x (64 MiB physical)
_VMEM_BUDGET = 44 * 1024 * 1024   # tile-sizing budget (headroom for Mosaic scratch)


def _cos_from_sums(w12, w1, w2, scale):
    # Modern torch eps handling: clamp each norm at eps before the divide.
    n1 = jnp.maximum(jnp.sqrt(w1), jnp.float32(_EPS))
    n2 = jnp.maximum(jnp.sqrt(w2), jnp.float32(_EPS))
    cos = w12 / (n1 * n2)
    return scale * (cos - 1.0)


def _cos_rel_kernel_fused(x_ref, scale_ref, o_ref):
    # x_ref: (TB, 2D) in native dtype, D a multiple of 128 -> both halves are
    # lane-tile-aligned, so the split is a free tile-aligned load.
    d = x_ref.shape[1] // 2
    doc = x_ref[:, :d].astype(jnp.float32)
    qry = x_ref[:, d:].astype(jnp.float32)
    w12 = jnp.sum(doc * qry, axis=1)       # (TB,)  lane reductions (XLU)
    w1 = jnp.sum(doc * doc, axis=1)
    w2 = jnp.sum(qry * qry, axis=1)
    o_ref[...] = _cos_from_sums(w12, w1, w2, scale_ref[0])[None, :]


def _cos_rel_kernel_split(doc_ref, qry_ref, scale_ref, o_ref):
    # Fallback for D not a multiple of 128: halves were materialized host-side.
    doc = doc_ref[...].astype(jnp.float32)
    qry = qry_ref[...].astype(jnp.float32)
    w12 = jnp.sum(doc * qry, axis=1)
    w1 = jnp.sum(doc * doc, axis=1)
    w2 = jnp.sum(qry * qry, axis=1)
    o_ref[...] = _cos_from_sums(w12, w1, w2, scale_ref[0])[None, :]


def _pick_block_b(batch: int, d: int, itemsize: int) -> int:
    # Per-row VMEM bytes resident per pipeline step:
    #   2 double-buffered native-dtype input rows
    # + ~4 row-sized f32 temporaries (doc/qry upcasts + product headroom, in
    #   case Mosaic does not fully fuse cast+mul+reduce vreg-at-a-time).
    per_row = 2 * (2 * d * itemsize) + 4 * (2 * d * 4)
    tb = max(int(_VMEM_BUDGET // per_row), 1)
    if batch <= tb:
        return batch                       # single full block: always legal
    # TODO(synk): for very wide embeddings (per_row > budget/128) add a D
    # reduction grid axis ("arbitrary") with w12/w1/w2 VMEM accumulators so TB
    # never collapses to 128 and the f32 working set stays inside v7x's VMEM.
    return max(_LANE, (tb // _LANE) * _LANE)


def cosine_similarity_relevance(x: jax.Array, scale, *, block_b: int | None = None):
    """x: (B, 2*D), scale: scalar -> (B,) float32, same math as the torch module."""
    assert x.ndim == 2 and x.shape[1] % 2 == 0
    batch, two_d = x.shape
    d = two_d // 2
    scale = jnp.asarray(scale, jnp.float32).reshape((1,))

    if block_b is not None:
        tb = min(block_b, batch)
    else:
        tb = min(_pick_block_b(batch, d, x.dtype.itemsize), batch)
        # Megacore (v7x): make sure the "parallel" batch axis has >= 2 grid
        # steps whenever the batch is large enough to keep tiles lane-dense.
        if tb >= batch and batch >= 2 * _LANE:
            tb = -(-((batch + 1) // 2) // _LANE) * _LANE

    grid = (pl.cdiv(batch, tb),)
    compiler_params = pltpu.CompilerParams(
        dimension_semantics=("parallel",),       # megacore sharding on v7x
        vmem_limit_bytes=_VMEM_LIMIT,
    )
    out_shape = jax.ShapeDtypeStruct((1, batch), jnp.float32)
    out_spec = pl.BlockSpec((1, tb), lambda i: (0, i))
    smem_spec = pl.BlockSpec(memory_space=pltpu.MemorySpace.SMEM)   # learned scalar

    if d % _LANE == 0:
        # Main path: single contiguous (tb, 2d) block; split in-kernel (free).
        out = pl.pallas_call(
            _cos_rel_kernel_fused,
            out_shape=out_shape,
            grid=grid,
            in_specs=[pl.BlockSpec((tb, two_d), lambda i: (i, 0)), smem_spec],
            out_specs=out_spec,
            compiler_params=compiler_params,
        )(x, scale)
    else:
        # TODO(synk): unaligned D still pays one extra HBM pass to materialize the
        # two halves; an in-kernel roll + lane-mask variant would avoid it.
        out = pl.pallas_call(
            _cos_rel_kernel_split,
            out_shape=out_shape,
            grid=grid,
            in_specs=[pl.BlockSpec((tb, d), lambda i: (i, 0)),
                      pl.BlockSpec((tb, d), lambda i: (i, 0)),
                      smem_spec],
            out_specs=out_spec,
            compiler_params=compiler_params,
        )(x[:, :d], x[:, d:], scale)

    return out[0]  # (B,), like the PyTorch module


def _reference(x, scale):
    """Pure-JAX mirror of torch.nn.functional.cosine_similarity semantics."""
    d = x.shape[1] // 2
    doc = x[:, :d].astype(jnp.float32)
    qry = x[:, d:].astype(jnp.float32)
    w12 = jnp.sum(doc * qry, axis=1)
    n1 = jnp.maximum(jnp.sqrt(jnp.sum(doc * doc, axis=1)), jnp.float32(_EPS))
    n2 = jnp.maximum(jnp.sqrt(jnp.sum(qry * qry, axis=1)), jnp.float32(_EPS))
    return jnp.float32(scale) * (w12 / (n1 * n2) - 1.0)


if __name__ == "__main__":
    key = jax.random.PRNGKey(0)
    k1, k2, k3, k4 = jax.random.split(key, 4)

    scale = jnp.float32(1.0)  # nn.Parameter(torch.tensor(1.0))

    # 1) Aligned path, auto tile picker (B=256 -> two 128-row blocks for megacore).
    B, D = 256, 128
    x = jax.random.normal(k1, (B, 2 * D), dtype=jnp.float32)
    out = jax.block_until_ready(cosine_similarity_relevance(x, scale))
    ref = _reference(x, scale)
    assert out.shape == (B,)
    assert jnp.allclose(out, ref, atol=1e-5, rtol=1e-5), (out, ref)

    # 2) bf16 embeddings: kernel loads bf16 from HBM and upcasts internally.
    xb = jax.random.normal(k2, (B, 2 * D), dtype=jnp.float32).astype(jnp.bfloat16)
    out_b = jax.block_until_ready(cosine_similarity_relevance(xb, scale))
    ref_b = _reference(xb, scale)
    assert jnp.allclose(out_b, ref_b, atol=1e-3, rtol=1e-3), (out_b, ref_b)

    # 3) Partial last block (B=384 -> blocks of 256 + masked tail of 128).
    xp = jax.random.normal(k4, (384, 2 * D), dtype=jnp.float32)
    out_p = jax.block_until_ready(cosine_similarity_relevance(xp, scale))
    ref_p = _reference(xp, scale)
    assert jnp.allclose(out_p, ref_p, atol=1e-5, rtol=1e-5), (out_p, ref_p)

    # 4) Unaligned-D fallback path (D=32, single block).
    xu = jax.random.normal(k3, (8, 2 * 32), dtype=jnp.float32)
    out_u = jax.block_until_ready(cosine_similarity_relevance(xu, scale))
    ref_u = _reference(xu, scale)
    assert jnp.allclose(out_u, ref_u, atol=1e-5, rtol=1e-5), (out_u, ref_u)

    print("KERNEL_OK")
</pallas_src>

<mosaic_0001>
module attributes {stable_mosaic.version = 11 : i64} {
  func.func @_cos_rel_kernel_fused(%arg0: i32, %arg1: memref<128x256xf32, #tpu.memory_space<vmem>>, %arg2: memref<1xf32, #tpu.memory_space<smem>>, %arg3: memref<1x128xf32, #tpu.memory_space<vmem>>) attributes {dimension_semantics = [#tpu.dimension_semantics<parallel>], iteration_bounds = array<i64: 2>, scalar_prefetch = 0 : i64, scratch_operands = 0 : i64, tpu.core_type = #tpu.core_type<tc>, window_params = [{transform_indices = @transform_0, window_bounds = array<i64: 128, 256>}, {transform_indices = @transform_1, window_bounds = array<i64: 1>}, {transform_indices = @transform_2, window_bounds = array<i64: 1, 128>}]} {
    %c0 = arith.constant 0 : index
    %c0_0 = arith.constant 0 : index
    %0 = vector.load %arg1[%c0, %c0_0] : memref<128x256xf32, #tpu.memory_space<vmem>>, vector<128x128xf32>
    %c0_1 = arith.constant 0 : index
    %c128 = arith.constant 128 : index
    %1 = vector.load %arg1[%c0_1, %c128] : memref<128x256xf32, #tpu.memory_space<vmem>>, vector<128x128xf32>
    %2 = arith.mulf %0, %1 : vector<128x128xf32>
    %cst = arith.constant dense<0.000000e+00> : vector<128xf32>
    %3 = vector.multi_reduction <add>, %2, %cst [1] : vector<128x128xf32> to vector<128xf32>
    %4 = arith.mulf %0, %0 : vector<128x128xf32>
    %cst_2 = arith.constant dense<0.000000e+00> : vector<128xf32>
    %5 = vector.multi_reduction <add>, %4, %cst_2 [1] : vector<128x128xf32> to vector<128xf32>
    %6 = arith.mulf %1, %1 : vector<128x128xf32>
    %cst_3 = arith.constant dense<0.000000e+00> : vector<128xf32>
    %7 = vector.multi_reduction <add>, %6, %cst_3 [1] : vector<128x128xf32> to vector<128xf32>
    %c0_4 = arith.constant 0 : index
    %8 = memref.load %arg2[%c0_4] : memref<1xf32, #tpu.memory_space<smem>>
    %9 = math.sqrt %5 : vector<128xf32>
    %cst_5 = arith.constant 9.99999993E-9 : f32
    %10 = vector.broadcast %cst_5 : f32 to vector<128xf32>
    %11 = arith.maximumf %9, %10 : vector<128xf32>
    %12 = math.sqrt %7 : vector<128xf32>
    %cst_6 = arith.constant 9.99999993E-9 : f32
    %13 = vector.broadcast %cst_6 : f32 to vector<128xf32>
    %14 = arith.maximumf %12, %13 : vector<128xf32>
    %15 = arith.mulf %11, %14 : vector<128xf32>
    %16 = arith.divf %3, %15 : vector<128xf32>
    %cst_7 = arith.constant 1.000000e+00 : f32
    %17 = vector.broadcast %cst_7 : f32 to vector<128xf32>
    %18 = arith.subf %16, %17 : vector<128xf32>
    %19 = vector.broadcast %8 : f32 to vector<128xf32>
    %20 = arith.mulf %19, %18 : vector<128xf32>
    %21 = vector.shape_cast %20 : vector<128xf32> to vector<1x128xf32>
    %c0_8 = arith.constant 0 : index
    %c0_9 = arith.constant 0 : index
    %22 = vector.load %arg3[%c0_8, %c0_9] : memref<1x128xf32, #tpu.memory_space<vmem>>, vector<1x128xf32>
    tpu.vector_store %arg3[%c0_8, %c0_9], %21 {strides = array<i32>} : memref<1x128xf32, #tpu.memory_space<vmem>>, vector<1x128xf32>,
    return
  }
  func.func @transform_0(%arg0: i32) -> (i32, i32) {
    %c0_i32 = arith.constant 0 : i32
    %c0_i32_0 = arith.constant 0 : i32
    return %arg0, %c0_i32 : i32, i32
  }
  func.func @transform_1(%arg0: i32) -> i32 {
    %c0_i32 = arith.constant 0 : i32
    %c0_i32_0 = arith.constant 0 : i32
    return %c0_i32 : i32
  }
  func.func @transform_2(%arg0: i32) -> (i32, i32) {
    %c0_i32 = arith.constant 0 : i32
    %c0_i32_0 = arith.constant 0 : i32
    return %c0_i32, %arg0 : i32, i32
  }
}

</mosaic_0001>

<bundles_post_ra>
// kernel: tpu_custom_call.1
= control target key start
LH: loop header
LB: loop body
LE: loop exit
PB: predicated region body
PF: predicated region fallthrough
CT: control target
= control target key end

     0   :  { %s2120_s0 = inlined_call_operand.hbm [shape: f32[256,256], index: 0, kind: input, shape index: {}]   ;;  %s2121_s1 = inlined_call_operand.<no memory space> [shape: f32[1], index: 1, kind: input, shape index: {}]   ;;  %s2122_s2 = inlined_call_operand.hbm [shape: f32[1,256], index: 2, kind: output, shape index: {}]  }
   0x1   :  { %7 = sst [smem:[#allocation2]] %s2121_s1 }
   0x2   :  { %8 = vsyncpa [#allocation4], 0 }
   0x3   :  { %10 = vsyncpa [#allocation4 + $0x1], 0 }
   0x4   :  { %11 = vsyncpa [#allocation5], 0 }
   0x5   :  { %13 = vsyncpa [#allocation5 + $0x1], 0  ;;  %s1176_s11 = smov 0   ;;  %s1178_s12 = smov 0  }
   0x6   :  { %s1180_s13 = smov 0   ;;  %s1182_s14 = smov 0  }
   0x7 LB: > { %s1197_s1 = sadd.s32 4294967295, %s1152_s14   ;;  %s886_s15 = sadd.s32 4294967294, %s1152_s14   ;;  %s1152_s14 = sphi %s1182_s14, %s2172_s14   ;;  %s1148_s13 = sphi %s1180_s13, %s2171_s13   ;;  %s1144_s12 = sphi %s1178_s12, %s2170_s12   ;;  %s1140_s11 = sphi %s1176_s11, %s2169_s11  }
   0x8   : > { %s1201_s16 = sadd.s32 1, %s1152_s14   ;;  %s26_s17 = sadd.s32 1, %s1148_s13 }
   0x9   : > { %s23_s18 = ssub.s32 %s1152_s14, %s1201_s16  ;;  %p33_p0 = scmp.ne.s32.totalorder %s1148_s13, %s1144_s12 }
   0xa   : > { %p24_p1 = scmp.eq.s32.totalorder %s23_s18, 0  ;;  %p34_p2 = scmp.eq.s32.totalorder %s1152_s14, 0 }
   0xb   : > { %p39_p3 = scmp.ne.s32.totalorder %s1144_s12, %s1140_s11  ;;  %p40_p4 = scmp.eq.s32.totalorder %s1197_s1, 0 }
   0xc   : > { %s1213_s19 = scalar_select %p24_p1, %s1148_s13, %s26_s17  }
   0xd   : > { %p1215_p5 = por %p34_p2, %p33_p0  ;;  %p1219_p6 = por %p40_p4, %p39_p3 }
   0xe   : > { %p84_p7 = scmp.eq.s32.totalorder %s1197_s1, 1  ;;  %p90_p8 = scmp.eq.s32.totalorder %s886_s15, 1 }
   0xf   : > { %s2128_s21 = scalar_select %p1219_p6, 1, 0 }
  0x10   : > { %p928_p10 = scmp.lt.s32.totalorder %s1152_s14, 2  ;;  %p1226_p11 = por %p84_p7, %p33_p0 }
  0x11   : > { %p1230_p12 = por %p90_p8, %p39_p3  ;;  %s113_s24 = sand.u32 1, %s1148_s13  }
  0x12   : > { %s2129_s22 = scalar_select %p1226_p11, 1, 0 }
  0x13   : > { %s2130_s23 = scalar_select %p1230_p12, 1, 0 }
  0x14   : > { %s915_s25 = sshll.u32 %s1152_s14, 12  ;;  %s889_s26 = sshll.u32 %s113_s24, 8 }
  0x15   : > { %s1239_s29 = scalar_lea.hbm %s2120_s0, %s915_s25  ;;  %s117_s30 = scalar_lea.vmem [#allocation3], %s889_s26 }
  0x16   : > { %s125_s3 = sshll.u32 %s117_s30, 4  ;;  %p1243_p13 = pnand %p928_p10, %p1215_p5  ;;  %s1247_s3 = int_to_ptr.vmem [resolvable:$true] %s125_s3 }
  0x17   : > { %s1249_s5 = scalar_lea.sflag [#allocation4], %s113_s24  ;;  %s1060_s6 = scalar_lea.hbm %s1239_s29, 4096 }
  0x18   : > { %p1061_p0 = scmp.ne.s32.totalorder %s1239_s29, %s1060_s6  ;;  %p1062_p1 = pneg %p1243_p13 }
  0x19   : > { %s1065_s9 = scalar_lea.hbm %s2120_s0, 8192  ;;  %p1066_p4 = scmp.lt.s32.totalorder %s1239_s29, %s2120_s0 }
  0x1a   : > { %p1063_p2 = pnand %p1062_p1, %p1061_p0  ;;  %p1067_p5 = scmp.lt.s32.totalorder %s1065_s9, %s1060_s6 }
  0x1c   : > { %p1064_p3 = pneg %p1063_p2  ;;  %p1068_p7 = por %p1067_p5, %p1066_p4 }
  0x1e   : > { %p1069_p8 = pnand %p1068_p7, %p1064_p3 }
  0x20   : > { %1072 = shalt.err (!%p1069_p8)
}
  0x21   : > { %s1073_s17 = scalar_lea.vmem %s1247_s3, 4096  ;;  %s1154_s18 = smov [#allocation3]  }
  0x22   : > { %p1074_p10 = scmp.ne.s32.totalorder %s1247_s3, %s1073_s17  ;;  %s1078_s20 = sshll.u32 %s1154_s18, 4  ;;  %s1079_s20 = int_to_ptr.vmem [resolvable:$false] %s1078_s20 }
  0x23   : > { %s1080_s24 = scalar_lea.vmem %s1079_s20, 8192  ;;  %p1081_p2 = scmp.lt.s32.totalorder %s1247_s3, %s1079_s20 }
  0x24   : > { %p1076_p9 = pnand %p1074_p10, %p1062_p1  ;;  %p1082_p12 = scmp.lt.s32.totalorder %s1080_s24, %s1073_s17 }
  0x26   : > { %p1077_p0 = pneg %p1076_p9  ;;  %p1083_p11 = por %p1082_p12, %p1081_p2 }
  0x28   : > { %p1084_p6 = pnand %p1083_p11, %p1077_p0 }
  0x2a   : > { %1087 = shalt.err (!%p1084_p6)
}
  0x2b   : > { %s1155_s25 = smov 256   ;;  %s1156_s26 = smov 16  }
  0x2c   : > { %923 = dma.hbm_to_vmem [thread:$0]  (!%p1243_p13), %s1239_s29, 4096, %s1247_s3, %s1249_s5, %s1155_s25, %s1155_s25, %s1156_s26  }
  0x2d   : > { %p893_p9 = scmp.ge.s32.totalorder %s1152_s14, 1  ;;  %p133_p1 = scmp.lt.s32.totalorder %s1152_s14, 3 }
  0x2f   : > { %p134_p3 = pnand %p893_p9, %p133_p1 }
  0x31   : > { %137 = sbr.rel (%p134_p3) target bundleno = 328 (0x148), region = 28 }
  0x36   : > { %s1273_s27 = sand.u32 1, %s1144_s12   ;;  %p2132_p6 = scmp.ne.s32.totalorder %s2128_s21, 0 }
  0x37   : > { %s894_s28 = sshll.u32 %s1273_s27, 8  ;;  %s140_s30 = scalar_lea.sflag [#allocation4], %s1273_s27 }
  0x38   : > { %s1277_s6 = scalar_lea.vmem [#allocation3], %s894_s28 }
  0x39   : > { %1131 = dma.done.wait (%p2132_p6), %s140_s30, 4096  }
  0x3a   : > { %1133 = vsyncadd (%p2132_p6), %s140_s30, 4294963200  ;;  %v180_v0 = vld [vmem:[%s1277_s6 + $0x8] sm:$0xff]  ;;  %v164_v1 = vld [vmem:[%s1277_s6] sm:$0xff]  ;;  %s340_s21 = sld [smem:[#allocation2]]  ;;  %s911_s29 = sshll.u32 %s1197_s1, 4 }
  0x3b   : > { %v1286_v2 = vld [vmem:[%s1277_s6 + $0x18] sm:$0xff]  ;;  %v292_v3 = vmul.f32 %v180_v0, %v180_v0  ;;  %v244_v4 = vmul.f32 %v164_v1, %v164_v1  ;;  %v1289_v5 = vld [vmem:[%s1277_s6 + $0x10] sm:$0xff]  ;;  %v1291_v6 = vmul.f32 %v180_v0, %v164_v1  ;;  %v1298_v9 = vld [vmem:[%s1277_s6 + $0x28] sm:$0xff]  ;;  %s162_s3 = scalar_lea.vmem [#allocation6], %s1273_s27  ;;  %s2083_s8 = scalar_lea.hbm %s2122_s2, %s911_s29 }
  0x3c   : > { %v293_v7 = vmul.f32 %v1286_v2, %v1286_v2  ;;  %v245_v8 = vmul.f32 %v1289_v5, %v1289_v5  ;;  %v1301_v10 = vld [vmem:[%s1277_s6 + $0x20] sm:$0xff]  ;;  %v294_v11 = vmul.f32 %v1298_v9, %v1298_v9  ;;  %v1308_v13 = vld [vmem:[%s1277_s6 + $0x38] sm:$0xff]  ;;  %v1311_v14 = vld [vmem:[%s1277_s6 + $0x30] sm:$0xff]  ;;  %v197_v1 = vmul.f32 %v1286_v2, %v1289_v5  ;;  %s820_s4 = sshll.u32 %s162_s3, 4  ;;  %s808_s9 = scalar_lea.sflag [#allocation5], %s1273_s27  ;;  %s821_s4 = int_to_ptr.vmem [resolvable:$true] %s820_s4 }
  0x3d   : > { %308 = vadd.xlane.f32.xlu1 %v292_v3  ;;  %260 = vadd.xlane.f32.xlu0 %v244_v4  ;;  %v246_v12 = vmul.f32 %v1301_v10, %v1301_v10  ;;  %v295_v15 = vmul.f32 %v1308_v13, %v1308_v13  ;;  %v247_v16 = vmul.f32 %v1311_v14, %v1311_v14  ;;  %v1318_v17 = vld [vmem:[%s1277_s6 + $0x48] sm:$0xff]  ;;  %v1321_v18 = vld [vmem:[%s1277_s6 + $0x40] sm:$0xff]  ;;  %v1328_v21 = vld [vmem:[%s1277_s6 + $0x58] sm:$0xff]  ;;  %s1088_s10 = scalar_lea.vmem %s821_s4, 16  ;;  %p2166_p12 = scmp.ne.s32.totalorder %s2129_s22, 0 }
  0x3e   : > { %v296_v19 = vmul.f32 %v1318_v17, %v1318_v17  ;;  %v248_v20 = vmul.f32 %v1321_v18, %v1321_v18  ;;  %v1331_v22 = vld [vmem:[%s1277_s6 + $0x50] sm:$0xff]  ;;  %v297_v23 = vmul.f32 %v1328_v21, %v1328_v21  ;;  %v1338_v25 = vld [vmem:[%s1277_s6 + $0x68] sm:$0xff]  ;;  %v1341_v26 = vld [vmem:[%s1277_s6 + $0x60] sm:$0xff]  ;;  %v199_v3 = vmul.f32 %v1308_v13, %v1311_v14  ;;  %p1089_p11 = scmp.ne.s32.totalorder %s821_s4, %s1088_s10  ;;  %s1157_s1 = smov [#allocation6]  }
  0x3f   : > { %v249_v24 = vmul.f32 %v1331_v22, %v1331_v22  ;;  %v298_v27 = vmul.f32 %v1338_v25, %v1338_v25  ;;  %v250_v28 = vmul.f32 %v1341_v26, %v1341_v26  ;;  %v1348_v29 = vld [vmem:[%s1277_s6 + $0x78] sm:$0xff]  ;;  %v1351_v30 = vld [vmem:[%s1277_s6 + $0x70] sm:$0xff]  ;;  %v1358_v33 = vld [vmem:[%s1277_s6 + $0x88] sm:$0xff]  ;;  %v198_v4 = vmul.f32 %v1298_v9, %v1301_v10  ;;  %s1092_s15 = sshll.u32 %s1157_s1, 4  ;;  %s1093_s15 = int_to_ptr.vmem [resolvable:$false] %s1092_s15 }
  0x40   : > { %v299_v31 = vmul.f32 %v1348_v29, %v1348_v29  ;;  %v251_v32 = vmul.f32 %v1351_v30, %v1351_v30  ;;  %v1361_v34 = vld [vmem:[%s1277_s6 + $0x80] sm:$0xff]  ;;  %v300_v35 = vmul.f32 %v1358_v33, %v1358_v33  ;;  %v189_v37 = vld [vmem:[%s1277_s6 + $0x98] sm:$0xff]  ;;  %v173_v38 = vld [vmem:[%s1277_s6 + $0x90] sm:$0xff]  ;;  %v203_v2 = vmul.f32 %v1348_v29, %v1351_v30  ;;  %p1090_p13 = pnand %p1089_p11, %p2166_p12  ;;  %s1094_s17 = scalar_lea.vmem %s1093_s15, 32 }
  0x41   : > { %310 = vadd.xlane.f32.xlu1 %v293_v7  ;;  %262 = vadd.xlane.f32.xlu0 %v245_v8  ;;  %v252_v36 = vmul.f32 %v1361_v34, %v1361_v34  ;;  %v301_v39 = vmul.f32 %v189_v37, %v189_v37  ;;  %v253_v40 = vmul.f32 %v173_v38, %v173_v38  ;;  %v190_v41 = vld [vmem:[%s1277_s6 + $0xa8] sm:$0xff]  ;;  %v174_v42 = vld [vmem:[%s1277_s6 + $0xa0] sm:$0xff]  ;;  %v191_v45 = vld [vmem:[%s1277_s6 + $0xb8] sm:$0xff]  ;;  %p1095_p5 = scmp.lt.s32.totalorder %s821_s4, %s1093_s15  ;;  %p1096_p7 = scmp.lt.s32.totalorder %s1094_s17, %s1088_s10 }
  0x42   : > { %v302_v43 = vmul.f32 %v190_v41, %v190_v41  ;;  %v254_v44 = vmul.f32 %v174_v42, %v174_v42  ;;  %v175_v46 = vld [vmem:[%s1277_s6 + $0xb0] sm:$0xff]  ;;  %v303_v47 = vmul.f32 %v191_v45, %v191_v45  ;;  %v192_v49 = vld [vmem:[%s1277_s6 + $0xc8] sm:$0xff]  ;;  %v176_v50 = vld [vmem:[%s1277_s6 + $0xc0] sm:$0xff]  ;;  %v201_v7 = vmul.f32 %v1328_v21, %v1331_v22  ;;  %p1091_p4 = pneg %p1090_p13 }
  0x43   : > { %v255_v48 = vmul.f32 %v175_v46, %v175_v46  ;;  %v304_v51 = vmul.f32 %v192_v49, %v192_v49  ;;  %v256_v52 = vmul.f32 %v176_v50, %v176_v50  ;;  %v193_v53 = vld [vmem:[%s1277_s6 + $0xd8] sm:$0xff]  ;;  %v177_v54 = vld [vmem:[%s1277_s6 + $0xd0] sm:$0xff]  ;;  %v194_v57 = vld [vmem:[%s1277_s6 + $0xe8] sm:$0xff]  ;;  %v200_v8 = vmul.f32 %v1318_v17, %v1321_v18  ;;  %p1097_p8 = por %p1096_p7, %p1095_p5 }
  0x44   : > { %v305_v55 = vmul.f32 %v193_v53, %v193_v53  ;;  %v257_v56 = vmul.f32 %v177_v54, %v177_v54  ;;  %v178_v58 = vld [vmem:[%s1277_s6 + $0xe0] sm:$0xff]  ;;  %v306_v59 = vmul.f32 %v194_v57, %v194_v57  ;;  %v195_v61 = vld [vmem:[%s1277_s6 + $0xf8] sm:$0xff]  ;;  %v179_v62 = vld [vmem:[%s1277_s6 + $0xf0] sm:$0xff]  ;;  %v202_v5 = vmul.f32 %v1338_v25, %v1341_v26 }
  0x45   : > { %312 = vadd.xlane.f32.xlu1 %v294_v11  ;;  %264 = vadd.xlane.f32.xlu0 %v246_v12  ;;  %v258_v60 = vmul.f32 %v178_v58, %v178_v58  ;;  %v307_v63 = vmul.f32 %v195_v61, %v195_v61  ;;  %v259_v0 = vmul.f32 %v179_v62, %v179_v62  ;;  %v694_v18 = vlaneseq  ;;  %p1098_p10 = pnand %p1097_p8, %p1091_p4 }
  0x46   : > { %v204_v9 = vmul.f32 %v1358_v33, %v1361_v34  ;;  %v207_v10 = vmul.f32 %v191_v45, %v175_v46  ;;  %v206_v11 = vmul.f32 %v190_v41, %v174_v42  ;;  %v209_v12 = vmul.f32 %v193_v53, %v177_v54 }
  0x47   : > { %v208_v13 = vmul.f32 %v192_v49, %v176_v50  ;;  %v210_v14 = vmul.f32 %v194_v57, %v178_v58  ;;  %v1410_v21 = vand.u32 127, %v694_v18  ;;  %v1444_v34 = vstv %s340_s21 }
  0x49   : > { %314 = vadd.xlane.f32.xlu1 %v295_v15  ;;  %266 = vadd.xlane.f32.xlu0 %v247_v16  ;;  %v211_v15 = vmul.f32 %v195_v61, %v179_v62  ;;  %v1421_v25 = vadd.s32 4294967288, %v1410_v21  ;;  %v1431_v29 = vadd.s32 4294967280, %v1410_v21  ;;  %v1434_v30 = vadd.s32 4294967256, %v1410_v21 }
  0x4a   : > { %v1469_v45 = vadd.s32 4294967224, %v1410_v21  ;;  %v1477_v49 = vadd.s32 4294967208, %v1410_v21 }
  0x4d   : > { %316 = vadd.xlane.f32.xlu1 %v296_v19  ;;  %268 = vadd.xlane.f32.xlu0 %v248_v20 }
  0x51   : > { %318 = vadd.xlane.f32.xlu1 %v297_v23  ;;  %270 = vadd.xlane.f32.xlu0 %v249_v24  ;;  %v1418_v24 = vshrl.u32 %v694_v18, 7 }
  0x55   : > { %320 = vadd.xlane.f32.xlu1 %v298_v27  ;;  %272 = vadd.xlane.f32.xlu0 %v250_v28  ;;  %v1428_v28 = vadd.s32 4294967272, %v1410_v21 }
  0x59   : > { %322 = vadd.xlane.f32.xlu1 %v299_v31  ;;  %274 = vadd.xlane.f32.xlu0 %v251_v32  ;;  %v1437_v31 = vadd.s32 4294967264, %v1410_v21  ;;  %v1441_v32 = vadd.s32 4294967240, %v1410_v21 }
  0x5b   : > { %2133 = vst [vmem:[#allocation9_spill] sm:$0xff] %v1437_v31  ;;  %2134 = vst [vmem:[#allocation10_spill] sm:$0xff] %v1441_v32 }
  0x5d   : > { %324 = vadd.xlane.f32.xlu1 %v300_v35  ;;  %276 = vadd.xlane.f32.xlu0 %v252_v36 }
  0x61   : > { %326 = vadd.xlane.f32.xlu1 %v301_v39  ;;  %278 = vadd.xlane.f32.xlu0 %v253_v40 }
  0x65   : > { %328 = vadd.xlane.f32.xlu1 %v302_v43  ;;  %280 = vadd.xlane.f32.xlu0 %v254_v44  ;;  %v1466_v44 = vadd.s32 4294967248, %v1410_v21 }
  0x69   : > { %330 = vadd.xlane.f32.xlu1 %v303_v47  ;;  %282 = vadd.xlane.f32.xlu0 %v255_v48  ;;  %v1474_v48 = vadd.s32 4294967232, %v1410_v21 }
  0x6d   : > { %332 = vadd.xlane.f32.xlu1 %v304_v51  ;;  %284 = vadd.xlane.f32.xlu0 %v256_v52  ;;  %v1483_v52 = vadd.s32 4294967216, %v1410_v21 }
  0x71   : > { %334 = vadd.xlane.f32.xlu1 %v305_v55  ;;  %286 = vadd.xlane.f32.xlu0 %v257_v56 }
  0x75   : > { %336 = vadd.xlane.f32.xlu1 %v306_v59  ;;  %288 = vadd.xlane.f32.xlu0 %v258_v60 }
  0x79   : > { %338 = vadd.xlane.f32.xlu1 %v307_v63  ;;  %290 = vadd.xlane.f32.xlu0 %v259_v0 }
  0x7d   : > { %214 = vadd.xlane.f32.xlu1 %v197_v1  ;;  %212 = vadd.xlane.f32.xlu0 %v1291_v6  ;;  %v205_v6 = vmul.f32 %v189_v37, %v173_v38 }
  0x81   : > { %218 = vadd.xlane.f32.xlu1 %v199_v3  ;;  %216 = vadd.xlane.f32.xlu0 %v198_v4 }
  0x85   : > { %222 = vadd.xlane.f32.xlu1 %v201_v7  ;;  %220 = vadd.xlane.f32.xlu0 %v200_v8 }
  0x89   : > { %226 = vadd.xlane.f32.xlu1 %v203_v2  ;;  %224 = vadd.xlane.f32.xlu0 %v202_v5 }
  0x8d   : > { %230 = vadd.xlane.f32.xlu1 %v205_v6  ;;  %228 = vadd.xlane.f32.xlu0 %v204_v9 }
  0x91   : > { %234 = vadd.xlane.f32.xlu1 %v207_v10  ;;  %232 = vadd.xlane.f32.xlu0 %v206_v11 }
  0x95   : > { %238 = vadd.xlane.f32.xlu1 %v209_v12  ;;  %236 = vadd.xlane.f32.xlu0 %v208_v13 }
  0x99   : > { %240 = vadd.xlane.f32.xlu0 %v210_v14  ;;  %242 = vadd.xlane.f32.xlu1 %v211_v15 }
  0xc6   : > { %v1398_v16 = vpop.xlane.xlu1 %308  ;;  %v1400_v17 = vpop.xlane.xlu0 %260 }
  0xc7   : > { %964 = vrsqrt.f32 %v1398_v16  ;;  %vm471_vm0 = vcmp.eq.f32.partialorder %v1398_v16, inf  ;;  %vm473_vm1 = vcmp.eq.f32.partialorder %v1398_v16, 0.0  ;;  %v474_v51 = vand.u32 2147483648, %v1398_v16 }
  0xc8   : > { %966 = vrsqrt.f32 %v1400_v17  ;;  %vm343_vm2 = vcmp.eq.f32.partialorder %v1400_v17, inf  ;;  %vm345_vm3 = vcmp.eq.f32.partialorder %v1400_v17, 0.0  ;;  %v346_v54 = vand.u32 2147483648, %v1400_v17 }
  0xca   : > { %v1403_v19 = vpop.xlane.xlu1 %310  ;;  %v1405_v20 = vpop.xlane.xlu0 %262 }
  0xcb   : > { %968 = vrsqrt.f32 %v1403_v19  ;;  %vm478_vm4 = vcmp.eq.f32.partialorder %v1403_v19, inf  ;;  %vm480_vm5 = vcmp.eq.f32.partialorder %v1403_v19, 0.0  ;;  %v481_v58 = vand.u32 2147483648, %v1403_v19 }
  0xcc   : > { %970 = vrsqrt.f32 %v1405_v20  ;;  %vm350_vm6 = vcmp.eq.f32.partialorder %v1405_v20, inf  ;;  %vm352_vm7 = vcmp.eq.f32.partialorder %v1405_v20, 0.0  ;;  %v353_v63 = vand.u32 2147483648, %v1405_v20 }
  0xce   : > { %v1412_v22 = vpop.xlane.xlu1 %312  ;;  %v1414_v23 = vpop.xlane.xlu0 %264 }
  0xcf   : > { %972 = vrsqrt.f32 %v1412_v22  ;;  %vm485_vm8 = vcmp.eq.f32.partialorder %v1412_v22, inf  ;;  %vm487_vm9 = vcmp.eq.f32.partialorder %v1412_v22, 0.0  ;;  %v488_v1 = vand.u32 2147483648, %v1412_v22 }
  0xd0   : > { %974 = vrsqrt.f32 %v1414_v23  ;;  %vm357_vm10 = vcmp.eq.f32.partialorder %v1414_v23, inf  ;;  %v360_v3 = vand.u32 2147483648, %v1414_v23  ;;  %vm359_vm11 = vcmp.eq.f32.partialorder %v1414_v23, 0.0 }
  0xd2   : > { %v1423_v26 = vpop.xlane.xlu1 %314  ;;  %v1425_v27 = vpop.xlane.xlu0 %266 }
  0xd3   : > { %976 = vrsqrt.f32 %v1423_v26  ;;  %vm492_vm12 = vcmp.eq.f32.partialorder %v1423_v26, inf  ;;  %v495_v10 = vand.u32 2147483648, %v1423_v26  ;;  %vm494_vm13 = vcmp.eq.f32.partialorder %v1423_v26, 0.0 }
  0xd4   : > { %978 = vrsqrt.f32 %v1425_v27  ;;  %v965_v33 = vpop.eup %964  ;;  %vm364_vm14 = vcmp.eq.f32.partialorder %v1425_v27, inf  ;;  %v367_v14 = vand.u32 2147483648, %v1425_v27  ;;  %vm366_vm15 = vcmp.eq.f32.partialorder %v1425_v27, 0.0 }
  0xd5   : > { %v967_v46 = vpop.eup %966  ;;  %v470_v47 = vmul.f32 %v965_v33, %v1398_v16 }
  0xd6   : > { %v1450_v37 = vpop.xlane.xlu1 %316  ;;  %v1452_v38 = vpop.xlane.xlu0 %268  ;;  %v342_v57 = vmul.f32 %v967_v46, %v1400_v17 }
  0xd7   : > { %980 = vrsqrt.f32 %v1450_v37  ;;  %v472_v60 = vsel %vm471_vm0, %v1398_v16, %v470_v47  ;;  %vm499_vm0 = vcmp.eq.f32.partialorder %v1450_v37, inf  ;;  %v502_v18 = vand.u32 2147483648, %v1450_v37 }
  0xd8   : > { %982 = vrsqrt.f32 %v1452_v38  ;;  %v969_v50 = vpop.eup %968  ;;  %v1517_v8 = vsel %vm473_vm1, %v474_v51, %v472_v60  ;;  %v344_v2 = vsel %vm343_vm2, %v1400_v17, %v342_v57  ;;  %vm501_vm1 = vcmp.eq.f32.partialorder %v1450_v37, 0.0 }
  0xd9   : > { %v971_v53 = vpop.eup %970  ;;  %v477_v61 = vmul.f32 %v969_v50, %v1403_v19  ;;  %v1541_v16 = vsel %vm345_vm3, %v346_v54, %v344_v2  ;;  %vm371_vm2 = vcmp.eq.f32.partialorder %v1452_v38, inf }
  0xda   : > { %v1489_v55 = vpop.xlane.xlu1 %318  ;;  %v1491_v56 = vpop.xlane.xlu0 %270  ;;  %v349_v62 = vmul.f32 %v971_v53, %v1405_v20 }
  0xdb   : > { %984 = vrsqrt.f32 %v1489_v55  ;;  %v479_v9 = vsel %vm478_vm4, %v1403_v19, %v477_v61  ;;  %vm506_vm3 = vcmp.eq.f32.partialorder %v1489_v55, inf  ;;  %vm373_vm4 = vcmp.eq.f32.partialorder %v1452_v38, 0.0 }
  0xdc   : > { %v973_v59 = vpop.eup %972  ;;  %986 = vrsqrt.f32 %v1491_v56  ;;  %v351_v12 = vsel %vm350_vm6, %v1405_v20, %v349_v62  ;;  %v1552_v47 = vsel %vm480_vm5, %v481_v58, %v479_v9  ;;  %v509_v62 = vand.u32 2147483648, %v1489_v55 }
  0xdd   : > { %v975_v0 = vpop.eup %974  ;;  %v484_v5 = vmul.f32 %v973_v59, %v1412_v22  ;;  %v1561_v53 = vsel %vm352_vm7, %v353_v63, %v351_v12  ;;  %v374_v59 = vand.u32 2147483648, %v1452_v38  ;;  %v582_v20 = vmax.f32 %v1552_v47, 1e-08 }
  0xde   : > { %v1511_v4 = vpop.xlane.xlu1 %320  ;;  %v1513_v7 = vpop.xlane.xlu0 %272  ;;  %v356_v13 = vmul.f32 %v975_v0, %v1414_v23  ;;  %v454_v2 = vmax.f32 %v1561_v53, 1e-08  ;;  %vm378_vm5 = vcmp.eq.f32.partialorder %v1491_v56, inf  ;;  %vm508_vm6 = vcmp.eq.f32.partialorder %v1489_v55, 0.0 }
  0xdf   : > { %988 = vrsqrt.f32 %v1511_v4  ;;  %v486_v17 = vsel %vm485_vm8, %v1412_v22, %v484_v5  ;;  %vm380_vm7 = vcmp.eq.f32.partialorder %v1491_v56, 0.0  ;;  %vm513_vm8 = vcmp.eq.f32.partialorder %v1511_v4, inf }
  0xe0   : > { %v977_v6 = vpop.eup %976  ;;  %990 = vrsqrt.f32 %v1513_v7  ;;  %v358_v58 = vsel %vm357_vm10, %v1414_v23, %v356_v13  ;;  %v1576_v60 = vsel %vm487_vm9, %v488_v1, %v486_v17  ;;  %v381_v13 = vand.u32 2147483648, %v1491_v56 }
  0xe1   : > { %v979_v11 = vpop.eup %978  ;;  %v491_v50 = vmul.f32 %v977_v6, %v1423_v26  ;;  %v1593_v1 = vsel %vm359_vm11, %v360_v3, %v358_v58  ;;  %v516_v23 = vand.u32 2147483648, %v1511_v4  ;;  %vm385_vm9 = vcmp.eq.f32.partialorder %v1513_v7, inf }
  0xe2   : > { %v1546_v33 = vpop.xlane.xlu1 %322  ;;  %v1548_v46 = vpop.xlane.xlu0 %274  ;;  %v363_v54 = vmul.f32 %v979_v11, %v1425_v27  ;;  %vm515_vm10 = vcmp.eq.f32.partialorder %v1511_v4, 0.0  ;;  %vm387_vm11 = vcmp.eq.f32.partialorder %v1513_v7, 0.0 }
  0xe3   : > { %992 = vrsqrt.f32 %v1546_v33  ;;  %v493_v5 = vsel %vm492_vm12, %v1423_v26, %v491_v50  ;;  %vm520_vm12 = vcmp.eq.f32.partialorder %v1546_v33, inf }
  0xe4   : > { %v981_v51 = vpop.eup %980  ;;  %994 = vrsqrt.f32 %v1548_v46  ;;  %v365_v6 = vsel %vm364_vm14, %v1425_v27, %v363_v54  ;;  %v1608_v3 = vsel %vm494_vm13, %v495_v10, %v493_v5  ;;  %v388_v5 = vand.u32 2147483648, %v1513_v7 }
  0xe5   : > { %v983_v19 = vpop.eup %982  ;;  %v498_v61 = vmul.f32 %v981_v51, %v1450_v37  ;;  %v1622_v58 = vsel %vm366_vm15, %v367_v14, %v365_v6  ;;  %vm392_vm13 = vcmp.eq.f32.partialorder %v1548_v46, inf  ;;  %vm522_vm14 = vcmp.eq.f32.partialorder %v1546_v33, 0.0 }
  0xe6   : > { %v1581_v63 = vpop.xlane.xlu1 %324  ;;  %v1583_v0 = vpop.xlane.xlu0 %276  ;;  %v370_v9 = vmul.f32 %v983_v19, %v1452_v38  ;;  %vm394_vm15 = vcmp.eq.f32.partialorder %v1548_v46, 0.0 }
  0xe7   : > { %996 = vrsqrt.f32 %v1581_v63  ;;  %v500_v17 = vsel %vm499_vm0, %v1450_v37, %v498_v61  ;;  %vm527_vm0 = vcmp.eq.f32.partialorder %v1581_v63, inf }
  0xe8   : > { %v985_v22 = vpop.eup %984  ;;  %998 = vrsqrt.f32 %v1583_v0  ;;  %v372_v61 = vsel %vm371_vm2, %v1452_v38, %v370_v9  ;;  %v530_v38 = vand.u32 2147483648, %v1581_v63  ;;  %vm529_vm2 = vcmp.eq.f32.partialorder %v1581_v63, 0.0 }
  0xe9   : > { %v987_v11 = vpop.eup %986  ;;  %v505_v50 = vmul.f32 %v985_v22, %v1489_v55  ;;  %v1637_v22 = vsel %vm501_vm1, %v502_v18, %v500_v17  ;;  %v1653_v37 = vsel %vm373_vm4, %v374_v59, %v372_v61  ;;  %v395_v17 = vand.u32 2147483648, %v1548_v46 }
  0xea   : > { %v1615_v51 = vpop.xlane.xlu1 %326  ;;  %v1617_v54 = vpop.xlane.xlu0 %278  ;;  %v377_v26 = vmul.f32 %v987_v11, %v1491_v56  ;;  %v523_v11 = vand.u32 2147483648, %v1546_v33  ;;  %vm399_vm1 = vcmp.eq.f32.partialorder %v1583_v0, inf  ;;  %vm401_vm4 = vcmp.eq.f32.partialorder %v1583_v0, 0.0 }
  0xeb   : > { %1000 = vrsqrt.f32 %v1615_v51  ;;  %v507_v43 = vsel %vm506_vm3, %v1489_v55, %v505_v50  ;;  %vm534_vm3 = vcmp.eq.f32.partialorder %v1615_v51, inf }
  0xec   : > { %v989_v10 = vpop.eup %988  ;;  %1002 = vrsqrt.f32 %v1617_v54  ;;  %v379_v18 = vsel %vm378_vm5, %v1491_v56, %v377_v26  ;;  %v1668_v26 = vsel %vm508_vm6, %v509_v62, %v507_v43  ;;  %v537_v56 = vand.u32 2147483648, %v1615_v51 }
  0xed   : > { %v991_v27 = vpop.eup %990  ;;  %v512_v6 = vmul.f32 %v989_v10, %v1511_v4  ;;  %v1678_v36 = vsel %vm380_vm7, %v381_v13, %v379_v18  ;;  %vm406_vm5 = vcmp.eq.f32.partialorder %v1617_v54, inf  ;;  %vm536_vm6 = vcmp.eq.f32.partialorder %v1615_v51, 0.0 }
  0xee   : > { %v384_v42 = vmul.f32 %v991_v27, %v1513_v7  ;;  %v1647_v41 = vpop.xlane.xlu1 %328  ;;  %v1649_v40 = vpop.xlane.xlu0 %280  ;;  %v409_v18 = vand.u32 2147483648, %v1617_v54 }
  0xef   : > { %1004 = vrsqrt.f32 %v1647_v41  ;;  %v514_v61 = vsel %vm513_vm8, %v1511_v4, %v512_v6  ;;  %vm541_vm7 = vcmp.eq.f32.partialorder %v1647_v41, inf  ;;  %vm408_vm8 = vcmp.eq.f32.partialorder %v1617_v54, 0.0 }
  0xf0   : > { %v993_v50 = vpop.eup %992  ;;  %1006 = vrsqrt.f32 %v1649_v40  ;;  %v386_v55 = vsel %vm385_vm9, %v1513_v7, %v384_v42  ;;  %v1696_v42 = vsel %vm515_vm10, %v516_v23, %v514_v61  ;;  %vm413_vm9 = vcmp.eq.f32.partialorder %v1649_v40, inf }
  0xf1   : > { %v995_v59 = vpop.eup %994  ;;  %v519_v27 = vmul.f32 %v993_v50, %v1546_v33  ;;  %v402_v50 = vand.u32 2147483648, %v1583_v0  ;;  %v1704_v10 = vsel %vm387_vm11, %v388_v5, %v386_v55  ;;  %v544_v55 = vand.u32 2147483648, %v1647_v41 }
  0xf2   : > { %v391_v43 = vmul.f32 %v995_v59, %v1548_v46  ;;  %v1685_v62 = vpop.xlane.xlu1 %330  ;;  %v1687_v6 = vpop.xlane.xlu0 %282  ;;  %vm543_vm10 = vcmp.eq.f32.partialorder %v1647_v41, 0.0  ;;  %vm415_vm11 = vcmp.eq.f32.partialorder %v1649_v40, 0.0 }
  0xf3   : > { %1008 = vrsqrt.f32 %v1685_v62  ;;  %v521_v39 = vsel %vm520_vm12, %v1546_v33, %v519_v27  ;;  %vm548_vm12 = vcmp.eq.f32.partialorder %v1685_v62, inf }
  0xf4   : > { %v997_v13 = vpop.eup %996  ;;  %1010 = vrsqrt.f32 %v1687_v6  ;;  %v393_v23 = vsel %vm392_vm13, %v1548_v46, %v391_v43  ;;  %v551_v46 = vand.u32 2147483648, %v1685_v62  ;;  %vm550_vm13 = vcmp.eq.f32.partialorder %v1685_v62, 0.0 }
  0xf5   : > { %v999_v59 = vpop.eup %998  ;;  %v526_v4 = vmul.f32 %v997_v13, %v1581_v63  ;;  %v1737_v12 = vsel %vm394_vm15, %v395_v17, %v393_v23  ;;  %vm422_vm15 = vcmp.eq.f32.partialorder %v1687_v6, 0.0 }
  0xf6   : > { %v398_v61 = vmul.f32 %v999_v59, %v1583_v0  ;;  %v1717_v7 = vpop.xlane.xlu1 %332  ;;  %v1719_v5 = vpop.xlane.xlu0 %284  ;;  %v1729_v59 = vsel %vm522_vm14, %v523_v11, %v521_v39  ;;  %v416_v39 = vand.u32 2147483648, %v1649_v40  ;;  %vm420_vm14 = vcmp.eq.f32.partialorder %v1687_v6, inf }
  0xf7   : > { %1012 = vrsqrt.f32 %v1717_v7  ;;  %v528_v35 = vsel %vm527_vm0, %v1581_v63, %v526_v4  ;;  %vm555_vm0 = vcmp.eq.f32.partialorder %v1717_v7, inf  ;;  %v558_v9 = vand.u32 2147483648, %v1717_v7 }
  0xf8   : > { %v1001_v43 = vpop.eup %1000  ;;  %1014 = vrsqrt.f32 %v1719_v5  ;;  %v400_v33 = vsel %vm399_vm1, %v1583_v0, %v398_v61  ;;  %vm557_vm1 = vcmp.eq.f32.partialorder %v1717_v7, 0.0 }
  0xf9   : > { %v1003_v27 = vpop.eup %1002  ;;  %v533_v19 = vmul.f32 %v1001_v43, %v1615_v51  ;;  %v1756_v43 = vsel %vm529_vm2, %v530_v38, %v528_v35  ;;  %v1769_v35 = vsel %vm401_vm4, %v402_v50, %v400_v33  ;;  %vm427_vm2 = vcmp.eq.f32.partialorder %v1719_v5, inf }
  0xfa   : > { %v405_v11 = vmul.f32 %v1003_v27, %v1617_v54  ;;  %v1749_v17 = vpop.xlane.xlu1 %334  ;;  %v1751_v4 = vpop.xlane.xlu0 %286  ;;  %v423_v27 = vand.u32 2147483648, %v1687_v6 }
  0xfb   : > { %1016 = vrsqrt.f32 %v1749_v17  ;;  %v535_v13 = vsel %vm534_vm3, %v1615_v51, %v533_v19  ;;  %vm429_vm3 = vcmp.eq.f32.partialorder %v1719_v5, 0.0  ;;  %vm562_vm4 = vcmp.eq.f32.partialorder %v1749_v17, inf }
  0xfc   : > { %v1005_v61 = vpop.eup %1004  ;;  %1018 = vrsqrt.f32 %v1751_v4  ;;  %v407_v38 = vsel %vm406_vm5, %v1617_v54, %v405_v11  ;;  %v1788_v50 = vsel %vm536_vm6, %v537_v56, %v535_v13  ;;  %vm564_vm5 = vcmp.eq.f32.partialorder %v1749_v17, 0.0 }
  0xfd   : > { %v1007_v63 = vpop.eup %1006  ;;  %v540_v23 = vmul.f32 %v1005_v61, %v1647_v41  ;;  %vm434_vm6 = vcmp.eq.f32.partialorder %v1751_v4, inf  ;;  %v2138_v61 = vmax.f32 %v1608_v3, 1e-08 }
  0xfe   : > { %v412_v19 = vmul.f32 %v1007_v63, %v1649_v40  ;;  %v1780_v15 = vpop.xlane.xlu1 %336  ;;  %v1782_v0 = vpop.xlane.xlu0 %288  ;;  %v1799_v63 = vsel %vm408_vm8, %v409_v18, %v407_v38 }
  0xff   : > { %v542_v33 = vsel %vm541_vm7, %v1647_v41, %v540_v23  ;;  %1020 = vrsqrt.f32 %v1780_v15  ;;  %v430_v23 = vand.u32 2147483648, %v1719_v5  ;;  %v462_v14 = vmax.f32 %v1799_v63, 1e-08 }
 0x100   : > { %v1009_v11 = vpop.eup %1008  ;;  %v414_v51 = vsel %vm413_vm9, %v1649_v40, %v412_v19  ;;  %1022 = vrsqrt.f32 %v1782_v0  ;;  %v1812_v54 = vsel %vm543_vm10, %v544_v55, %v542_v33  ;;  %v437_v40 = vand.u32 2147483648, %v1751_v4 }
 0x101   : > { %v1011_v56 = vpop.eup %1010  ;;  %v547_v13 = vmul.f32 %v1009_v11, %v1685_v62  ;;  %v1816_v18 = vsel %vm415_vm11, %v416_v39, %v414_v51  ;;  %vm436_vm7 = vcmp.eq.f32.partialorder %v1751_v4, 0.0  ;;  %vm569_vm8 = vcmp.eq.f32.partialorder %v1780_v15, inf }
 0x102   : > { %v419_v38 = vmul.f32 %v1011_v56, %v1687_v6  ;;  %v1820_v19 = vpop.xlane.xlu1 %338  ;;  %v1822_v11 = vpop.xlane.xlu0 %290  ;;  %v444_v63 = vand.u32 2147483648, %v1782_v0  ;;  %vm571_vm9 = vcmp.eq.f32.partialorder %v1780_v15, 0.0  ;;  %vm441_vm10 = vcmp.eq.f32.partialorder %v1782_v0, inf }
 0x103   : > { %v549_v41 = vsel %vm548_vm12, %v1685_v62, %v547_v13  ;;  %1024 = vrsqrt.f32 %v1820_v19  ;;  %vm443_vm11 = vcmp.eq.f32.partialorder %v1782_v0, 0.0  ;;  %vm576_vm12 = vcmp.eq.f32.partialorder %v1820_v19, inf }
 0x104   : > { %v1013_v55 = vpop.eup %1012  ;;  %v1834_v39 = vsel %vm550_vm13, %v551_v46, %v549_v41  ;;  %v421_v33 = vsel %vm420_vm14, %v1687_v6, %v419_v38  ;;  %1026 = vrsqrt.f32 %v1822_v11  ;;  %vm578_vm13 = vcmp.eq.f32.partialorder %v1820_v19, 0.0 }
 0x105   : > { %v1015_v51 = vpop.eup %1014  ;;  %v424_v62 = vsel %vm422_vm15, %v423_v27, %v421_v33  ;;  %v554_v46 = vmul.f32 %v1013_v55, %v1717_v7  ;;  %v592_v41 = vmax.f32 %v1834_v39, 1e-08  ;;  %v598_v27 = vmul.f32 %v582_v20, %v454_v2 }
 0x106   : > { %v426_v38 = vmul.f32 %v1015_v51, %v1719_v5  ;;  %v1852_v57 = vpop.xlane.xlu1 %214  ;;  %v1854_v56 = vpop.xlane.xlu0 %212  ;;  %v2135_v55 = vmax.f32 %v1541_v16, 1e-08  ;;  %v2136_v39 = vmax.f32 %v1517_v8, 1e-08  ;;  %v2137_v51 = vmax.f32 %v1622_v58, 1e-08 }
 0x107   : > { %v556_v6 = vsel %vm555_vm0, %v1717_v7, %v554_v46  ;;  %v464_v32 = vmax.f32 %v424_v62, 1e-08  ;;  %v2139_v16 = vmax.f32 %v1593_v1, 1e-08  ;;  %v2140_v8 = vmax.f32 %v1576_v60, 1e-08 }
 0x108   : > { %v597_v33 = vmul.f32 %v2136_v39, %v2135_v55  ;;  %v600_v13 = vmul.f32 %v2138_v61, %v2137_v51  ;;  %v1017_v46 = vpop.eup %1016  ;;  %v559_v31 = vsel %vm557_vm1, %v558_v9, %v556_v6  ;;  %v428_v47 = vsel %vm427_vm2, %v1719_v5, %v426_v38 }
 0x109   : > { %v599_v53 = vmul.f32 %v2140_v8, %v2139_v16  ;;  %v1019_v20 = vpop.eup %1018  ;;  %v593_v2 = vmax.f32 %v559_v31, 1e-08  ;;  %v561_v3 = vmul.f32 %v1017_v46, %v1749_v17  ;;  %1028 = vrcp.f32 %v598_v27 }
 0x10a   : > { %v2141_v58 = vmax.f32 %v1678_v36, 1e-08  ;;  %v2142_v9 = vmax.f32 %v1668_v26, 1e-08  ;;  %v431_v61 = vsel %vm429_vm3, %v430_v23, %v428_v47  ;;  %v433_v62 = vmul.f32 %v1019_v20, %v1751_v4  ;;  %v1892_v60 = vpop.xlane.xlu1 %218  ;;  %v1894_v1 = vpop.xlane.xlu0 %216 }
 0x10b   : > { %1030 = vrcp.f32 %v597_v33  ;;  %v2143_v31 = vmax.f32 %v1653_v37, 1e-08  ;;  %v2144_v38 = vmax.f32 %v1637_v22, 1e-08  ;;  %v563_v26 = vsel %vm562_vm4, %v1749_v17, %v561_v3 }
 0x10c   : > { %v602_v7 = vmul.f32 %v2142_v9, %v2141_v58  ;;  %vm448_vm14 = vcmp.eq.f32.partialorder %v1822_v11, inf  ;;  %1032 = vrcp.f32 %v600_v13  ;;  %v2145_v5 = vmax.f32 %v1737_v12, 1e-08  ;;  %v1021_v55 = vpop.eup %1020 }
 0x10d   : > { %v601_v36 = vmul.f32 %v2144_v38, %v2143_v31  ;;  %v2146_v23 = vmax.f32 %v1729_v59, 1e-08  ;;  %v2147_v27 = vmax.f32 %v1704_v10, 1e-08  ;;  %v2148_v37 = vmax.f32 %v1696_v42, 1e-08  ;;  %v1023_v51 = vpop.eup %1022 }
 0x10e   : > { %v2149_v39 = vand.u32 2147483648, %v1749_v17  ;;  %v435_v13 = vsel %vm434_vm6, %v1751_v4, %v433_v62  ;;  %1034 = vrcp.f32 %v599_v53  ;;  %v2150_v12 = vmax.f32 %v1788_v50, 1e-08  ;;  %v1926_v8 = vpop.xlane.xlu1 %222  ;;  %v1928_v20 = vpop.xlane.xlu0 %220 }
 0x10f   : > { %v604_v6 = vmul.f32 %v2146_v23, %v2145_v5  ;;  %v603_v22 = vmul.f32 %v2148_v37, %v2147_v27  ;;  %v438_v10 = vsel %vm436_vm7, %v437_v40, %v435_v13  ;;  %v568_v42 = vmul.f32 %v1021_v55, %v1780_v15 }
 0x110   : > { %v566_v33 = vsel %vm564_vm5, %v2149_v39, %v563_v26  ;;  %v606_v59 = vmul.f32 %v2150_v12, %v462_v14  ;;  %1036 = vrcp.f32 %v602_v7  ;;  %v465_v47 = vmax.f32 %v431_v61, 1e-08  ;;  %v1025_v3 = vpop.eup %1024 }
 0x111   : > { %v594_v46 = vmax.f32 %v566_v33, 1e-08  ;;  %v466_v16 = vmax.f32 %v438_v10, 1e-08  ;;  %v440_v17 = vmul.f32 %v1023_v51, %v1782_v0  ;;  %1038 = vrcp.f32 %v601_v36  ;;  %v1027_v62 = vpop.eup %1026 }
 0x112   : > { %v570_v14 = vsel %vm569_vm8, %v1780_v15, %v568_v42  ;;  %1040 = vrcp.f32 %v604_v6  ;;  %v2151_v4 = vmax.f32 %v1769_v35, 1e-08  ;;  %v2152_v50 = vmax.f32 %v1756_v43, 1e-08  ;;  %v1951_v38 = vpop.xlane.xlu0 %224 }
 0x113   : > { %v608_v53 = vmul.f32 %v592_v41, %v464_v32  ;;  %v2153_v58 = vand.u32 2147483648, %v1780_v15  ;;  %v442_v7 = vsel %vm441_vm10, %v1782_v0, %v440_v17  ;;  %1042 = vrcp.f32 %v603_v22  ;;  %v1949_v15 = vpop.xlane.xlu1 %226 }
 0x114   : > { %v605_v40 = vmul.f32 %v2152_v50, %v2151_v4  ;;  %v610_v61 = vmul.f32 %v594_v46, %v466_v16  ;;  %v445_v35 = vsel %vm443_vm11, %v444_v63, %v442_v7  ;;  %v575_v43 = vmul.f32 %v1025_v3, %v1820_v19 }
 0x115   : > { %v573_v9 = vsel %vm571_vm9, %v2153_v58, %v570_v14  ;;  %1044 = vrcp.f32 %v606_v59  ;;  %v467_v32 = vmax.f32 %v445_v35, 1e-08  ;;  %v447_v41 = vmul.f32 %v1027_v62, %v1822_v11 }
 0x116   : > { %v595_v31 = vmax.f32 %v573_v9, 1e-08  ;;  %vm450_vm15 = vcmp.eq.f32.partialorder %v1822_v11, 0.0  ;;  %v2154_v36 = vmax.f32 %v1816_v18, 1e-08  ;;  %v577_v0 = vsel %vm576_vm12, %v1820_v19, %v575_v43  ;;  %v1029_v39 = vpop.eup %1028  ;;  %v1973_v13 = vpop.xlane.xlu0 %228 }
 0x117   : > { %v2155_v26 = vmax.f32 %v1812_v54, 1e-08  ;;  %v451_v63 = vand.u32 2147483648, %v1822_v11  ;;  %1046 = vrcp.f32 %v605_v40  ;;  %v609_v23 = vmul.f32 %v593_v2, %v465_v47 }
 0x118   : > { %v2156_v6 = vand.u32 2147483648, %v1820_v19  ;;  %v449_v18 = vsel %vm448_vm14, %v1822_v11, %v447_v41  ;;  %1048 = vrcp.f32 %v608_v53  ;;  %v611_v54 = vmul.f32 %v595_v31, %v467_v32  ;;  %v231_v19 = vpop.xlane.xlu1 %230  ;;  %v1031_v12 = vpop.eup %1030 }
 0x119   : > { %v607_v5 = vmul.f32 %v2155_v26, %v2154_v36  ;;  %v452_v22 = vsel %vm450_vm15, %v451_v63, %v449_v18  ;;  %vm705_vm0 = vcmask 130112   ;;  %v1969_v55 = vadd.s32 4294967192, %v1410_v21  ;;  %v1033_v10 = vpop.eup %1032 }
 0x11a   : > { %v580_v27 = vsel %vm578_vm13, %v2156_v6, %v577_v0  ;;  %1050 = vrcp.f32 %v610_v61  ;;  %v468_v2 = vmax.f32 %v452_v22, 1e-08  ;;  %v738_v33 = vsub.s32 %v1466_v44, %v1418_v24  ;;  %v233_v3 = vpop.xlane.xlu0 %232 }
 0x11b   : > { %v596_v37 = vmax.f32 %v580_v27, 1e-08  ;;  %1052 = vrcp.f32 %v607_v5  ;;  %v1976_v11 = vadd.s32 4294967200, %v1410_v21  ;;  %v616_v59 = vmul.f32 %v1029_v39, %v1852_v57  ;;  %v1035_v17 = vpop.eup %1034 }
 0x11c   : > { %vm712_vm1 = vcmask 195712   ;;  %v759_v51 = vsub.s32 %v1469_v45, %v1418_v24  ;;  %v752_v46 = vsub.s32 %v1474_v48, %v1418_v24  ;;  %1054 = vrcp.f32 %v611_v54  ;;  %v235_v62 = vpop.xlane.xlu1 %234 }
 0x11d   : > { %v614_v42 = vmul.f32 %v1031_v12, %v1854_v56  ;;  %vm719_vm2 = vcmask 261312   ;;  %v773_v47 = vsub.s32 %v1477_v49, %v1418_v24  ;;  %1056 = vrcp.f32 %v609_v23  ;;  %v1037_v40 = vpop.eup %1036 }
 0x11e   : > { %v612_v16 = vmul.f32 %v596_v37, %v468_v2  ;;  %v896_v14 = vadd.f32 -1.0, %v616_v59  ;;  %v620_v57 = vmul.f32 %v1033_v10, %v1892_v60  ;;  %vm726_vm3 = vcmask 326912   ;;  %v1039_v9 = vpop.eup %1038  ;;  %v237_v37 = vpop.xlane.xlu0 %236 }
 0x11f   : > { %v766_v4 = vsub.s32 %v1483_v52, %v1418_v24  ;;  %v787_v50 = vsub.s32 %v1969_v55, %v1418_v24  ;;  %v895_v53 = vadd.f32 -1.0, %v614_v42  ;;  %v618_v56 = vmul.f32 %v1035_v17, %v1894_v1  ;;  %v1041_v35 = vpop.eup %1040 }
 0x120   : > { %vm733_vm4 = vcmask 392512   ;;  %v780_v58 = vsub.s32 %v1976_v11, %v1418_v24  ;;  %1058 = vrcp.f32 %v612_v16  ;;  %v663_v60 = vmul.f32 %v896_v14, %v1444_v34  ;;  %v1043_v36 = vpop.eup %1042 }
 0x121   : > { %v898_v7 = vadd.f32 -1.0, %v620_v57  ;;  %v624_v61 = vmul.f32 %v1037_v40, %v1926_v8  ;;  %vm740_vm5 = vcmask 458112   ;;  %v1997_v31 = vadd.s32 4294967184, %v1410_v21  ;;  %v239_v40 = vpop.xlane.xlu1 %238 }
 0x122   : > { %v662_v1 = vmul.f32 %v895_v53, %v1444_v34  ;;  %v897_v43 = vadd.f32 -1.0, %v618_v56  ;;  %v622_v32 = vmul.f32 %v1039_v9, %v1928_v20  ;;  %v2002_v41 = vadd.s32 4294967176, %v1410_v21  ;;  %v1045_v23 = vpop.eup %1044  ;;  %v2162_v56 = vld [vmem:[#allocation9_spill] sm:$0xff] }
 0x123   : > { %v2157_v26 = vsub.s32 %v1421_v25, %v1418_v24  ;;  %v665_v8 = vmul.f32 %v898_v7, %v1444_v34  ;;  %v900_v0 = vadd.f32 -1.0, %v624_v61  ;;  %v628_v63 = vmul.f32 %v1041_v35, %v1949_v15 }
 0x124   : > { %vm747_vm6 = vcmask 523712   ;;  %v2158_v6 = vsub.s32 %v1410_v21, %v1418_v24  ;;  %v664_v20 = vmul.f32 %v897_v43, %v1444_v34  ;;  %v899_v18 = vadd.f32 -1.0, %v622_v32  ;;  %v1047_v12 = vpop.eup %1046 }
 0x125   : > { %v704_v5 = vrot.slane %v663_v60, %v2157_v26  ;;  %v626_v54 = vmul.f32 %v1043_v36, %v1951_v38  ;;  %vm754_vm7 = vcmask 589312   ;;  %v2159_v25 = vsub.s32 %v1428_v28, %v1418_v24  ;;  %v1049_v16 = vpop.eup %1048 }
 0x126   : > { %v699_v27 = vrot.slane %v662_v1, %v2158_v6  ;;  %v667_v39 = vmul.f32 %v900_v0, %v1444_v34  ;;  %v902_v15 = vadd.f32 -1.0, %v628_v63  ;;  %v632_v2 = vmul.f32 %v1045_v23, %v231_v19  ;;  %v2164_v1 = vld [vmem:[#allocation10_spill] sm:$0xff]  ;;  %v241_v63 = vpop.xlane.xlu0 %240 }
 0x127   : > { %v718_v22 = vrot.slane %v665_v8, %v2159_v25  ;;  %v2160_v21 = vsub.s32 %v1431_v29, %v1418_v24  ;;  %v666_v42 = vmul.f32 %v899_v18, %v1444_v34  ;;  %v901_v38 = vadd.f32 -1.0, %v626_v54  ;;  %v1051_v53 = vpop.eup %1050  ;;  %v243_v54 = vpop.xlane.xlu1 %242 }
 0x128   : > { %v706_v59 = vsel %vm705_vm0, %v704_v5, %v699_v27  ;;  %vm761_vm8 = vcmask 654912   ;;  %v2161_v28 = vsub.s32 %v1434_v30, %v1418_v24  ;;  %v669_v14 = vmul.f32 %v902_v15, %v1444_v34  ;;  %v1053_v30 = vpop.eup %1052 }
 0x129   : > { %v711_v10 = vrot.slane %v664_v20, %v2160_v21  ;;  %v904_v57 = vadd.f32 -1.0, %v632_v2  ;;  %v630_v19 = vmul.f32 %v1047_v12, %v1973_v13  ;;  %vm768_vm9 = vcmask 720512   ;;  %v1055_v26 = vpop.eup %1054 }
 0x12a   : > { %v732_v17 = vrot.slane %v667_v39, %v2161_v28  ;;  %v2163_v9 = vsub.s32 %v2162_v56, %v1418_v24  ;;  %v668_v7 = vmul.f32 %v901_v38, %v1444_v34  ;;  %v636_v61 = vmul.f32 %v1049_v16, %v235_v62  ;;  %v1057_v23 = vpop.eup %1056 }
 0x12b   : > { %v713_v29 = vsel %vm712_vm1, %v711_v10, %v706_v59  ;;  %vm775_vm10 = vcmask 786112   ;;  %v2165_v43 = vsub.s32 %v2164_v1, %v1418_v24  ;;  %v671_v32 = vmul.f32 %v904_v57, %v1444_v34 }
 0x12c   : > { %v725_v60 = vrot.slane %v666_v42, %v2163_v9  ;;  %v720_v35 = vsel %vm719_vm2, %v718_v22, %v713_v29  ;;  %v903_v36 = vadd.f32 -1.0, %v630_v19  ;;  %v739_v8 = vrot.slane %v668_v7, %v738_v33 }
 0x12d   : > { %v746_v13 = vrot.slane %v669_v14, %v2165_v43  ;;  %v906_v0 = vadd.f32 -1.0, %v636_v61  ;;  %v634_v62 = vmul.f32 %v1053_v30, %v233_v3  ;;  %v640_v20 = vmul.f32 %v1051_v53, %v239_v40  ;;  %v1059_v33 = vpop.eup %1058 }
 0x12e   : > { %v727_v5 = vsel %vm726_vm3, %v725_v60, %v720_v35  ;;  %v670_v27 = vmul.f32 %v903_v36, %v1444_v34  ;;  %v794_v18 = vsub.s32 %v1997_v31, %v1418_v24  ;;  %v638_v44 = vmul.f32 %v1057_v23, %v237_v37 }
 0x12f   : > { %v734_v6 = vsel %vm733_vm4, %v732_v17, %v727_v5  ;;  %v673_v22 = vmul.f32 %v906_v0, %v1444_v34  ;;  %v905_v39 = vadd.f32 -1.0, %v634_v62  ;;  %v760_v3 = vrot.slane %v671_v32, %v759_v51 }
 0x130   : > { %v741_v25 = vsel %vm740_vm5, %v739_v8, %v734_v6  ;;  %v753_v15 = vrot.slane %v670_v27, %v752_v46  ;;  %v908_v2 = vadd.f32 -1.0, %v640_v20  ;;  %v642_v12 = vmul.f32 %v1055_v26, %v241_v63 }
 0x131   : > { %v748_v31 = vsel %vm747_vm6, %v746_v13, %v741_v25  ;;  %v672_v59 = vmul.f32 %v905_v39, %v1444_v34  ;;  %v907_v21 = vadd.f32 -1.0, %v638_v44  ;;  %v644_v10 = vmul.f32 %v1059_v33, %v243_v54 }
 0x132   : > { %v755_v42 = vsel %vm754_vm7, %v753_v15, %v748_v31  ;;  %v774_v37 = vrot.slane %v673_v22, %v773_v47  ;;  %v675_v45 = vmul.f32 %v908_v2, %v1444_v34  ;;  %v909_v51 = vadd.f32 -1.0, %v642_v12 }
 0x133   : > { %v767_v48 = vrot.slane %v672_v59, %v766_v4  ;;  %v674_v46 = vmul.f32 %v907_v21, %v1444_v34  ;;  %v801_v38 = vsub.s32 %v2002_v41, %v1418_v24  ;;  %v910_v16 = vadd.f32 -1.0, %v644_v10 }
 0x134   : > { %v762_v28 = vsel %vm761_vm8, %v760_v3, %v755_v42  ;;  %v788_v49 = vrot.slane %v675_v45, %v787_v50  ;;  %vm782_vm11 = vcmask 851712   ;;  %v676_v47 = vmul.f32 %v909_v51, %v1444_v34 }
 0x135   : > { %v769_v52 = vsel %vm768_vm9, %v767_v48, %v762_v28  ;;  %v781_v4 = vrot.slane %v674_v46, %v780_v58  ;;  %vm789_vm12 = vcmask 917312   ;;  %v677_v17 = vmul.f32 %v910_v16, %v1444_v34 }
 0x136   : > { %v776_v41 = vsel %vm775_vm10, %v774_v37, %v769_v52  ;;  %vm796_vm13 = vcmask 982912   ;;  %v795_v14 = vrot.slane %v676_v47, %v794_v18  ;;  %vm803_vm14 = vcmask 1048512  }
 0x137   : > { %v783_v55 = vsel %vm782_vm11, %v781_v4, %v776_v41  ;;  %v802_v50 = vrot.slane %v677_v17, %v801_v38 }
 0x138   : > { %v790_v57 = vsel %vm789_vm12, %v788_v49, %v783_v55 }
 0x139   : > { %v797_v19 = vsel %vm796_vm13, %v795_v14, %v790_v57 }
 0x13a   : > { %v804_v24 = vsel %vm803_vm14, %v802_v50, %v797_v19 }
 0x13b   : > { %806 = vst [vmem:[%s162_s3] sm:$0x1] %v804_v24 }
 0x13c   : > { %1101 = shalt.err (!%p1098_p10)
}
 0x13d   : > { %s1102_s18 = scalar_lea.hbm %s2083_s8, 16  ;;  %s1106_s25 = scalar_lea.hbm %s2122_s2, 32 }
 0x13e   : > { %p1103_p0 = scmp.ne.s32.totalorder %s2083_s8, %s1102_s18  ;;  %p1107_p1 = scmp.lt.s32.totalorder %s2083_s8, %s2122_s2 }
 0x13f   : > { %p1108_p3 = scmp.lt.s32.totalorder %s1106_s25, %s1102_s18 }
 0x140   : > { %p1104_p2 = pnand %p1103_p0, %p2166_p12 }
 0x141   : > { %p1109_p6 = por %p1108_p3, %p1107_p1 }
 0x142   : > { %p1105_p9 = pneg %p1104_p2 }
 0x144   : > { %p1110_p11 = pnand %p1109_p6, %p1105_p9 }
 0x146   : > { %1113 = shalt.err (!%p1110_p11)
}
 0x147   : > { %918 = dma.vmem_to_hbm [thread:$0]  (%p2166_p12), %s821_s4, 16, %s2083_s8, %s808_s9  }
 0x148 PF: > { %s832_s28 = sand.u32 1, %s1140_s11   ;;  %p2167_p13 = scmp.ne.s32.totalorder %s2130_s23, 0 }
 0x149   : > { %p2168_p4 = scmp.ge.s32.totalorder %s1152_s14, 2  ;;  %s833_s30 = scalar_lea.sflag [#allocation5], %s832_s28 }
 0x14b   : > { %p925_p5 = pnand %p2168_p4, %p2167_p13 }
 0x14d   : > { %p926_p7 = pneg %p925_p5 }
 0x14f   : > { %1135 = dma.done.wait (%p926_p7), %s833_s30, 16  }
 0x150   : > { %1137 = vsyncadd (%p926_p7), %s833_s30, 4294967280  ;;  %p16_p8 = scmp.ge.s32.totalorder %s1201_s16, 4   ;;  %s2169_s11 = smov %s1144_s12 }
 0x151   : > { %s2170_s12 = smov %s1148_s13  ;;  %s2171_s13 = smov %s1213_s19 }
 0x152   : > { %s2172_s14 = smov %s1201_s16  ;;  %18 = sbr.rel (!%p16_p8) target bundleno = 7 (0x7), region = 73 }
 0x157   :  { %837 = vsyncpa [#allocation4], 1 }
 0x158   :  { %839 = vsyncpa [#allocation4 + $0x1], 1 }
 0x159   :  { %840 = vsyncpa [#allocation5], 1 }
 0x15a   :  { %842 = vsyncpa [#allocation5 + $0x1], 1 }

</bundles_post_ra>
